<compile_context>
chip_gen: v5e
topology: v5e:2x2
jax: 0.10.0
libtpu: 0.0.40
codegen_flags: <defaults>
</compile_context>

<pallas_src>
import jax
import jax.numpy as jnp
from jax.experimental import pallas as pl
from jax.experimental.pallas import tpu as pltpu


def _repeat_to_3_kernel(x_ref, o_ref):
    # x_ref: (1, th, W) single-channel tile; o_ref: (3, th, W) output tile.
    # One VMEM read, broadcast-store into all 3 output channels (VPU work is
    # free here — the kernel is HBM-bandwidth bound).
    o_ref[...] = jnp.broadcast_to(x_ref[...], o_ref.shape)


def resize_channels(image: jax.Array, *, block_h: int | None = None) -> jax.Array:
    """Pallas implementation of ResizeChannels.forward (CHW, no batch dim).

    block_h: optional override of the H-tile size (rounded to the dtype's
    sublane pack); None = auto-size from the VMEM budget.
    """
    C, H, W = image.shape

    # Static (trace-time) branch, mirroring the Python-level shape check.
    if C != 1:
        # Pure passthrough: no kernel launch, no HBM copy traffic.
        return image

    itemsize = jnp.dtype(image.dtype).itemsize
    # Sublane pack for this dtype: f32 -> 8, bf16 -> 16, int8/fp8 -> 32.
    pack = max(8, 32 // itemsize)

    if block_h is None:
        # Per-step VMEM = (1 input + 3 output) row-blocks, x2 double-buffered
        #               = 8 * th * W * itemsize bytes.
        # ~12 MiB budget: headroom under v5e's 16 MiB default scoped VMEM,
        # well inside v6e/v7x's 32 MiB default.
        budget = 12 << 20
        th = (budget // (8 * W * itemsize) // pack) * pack
        if th <= 0:
            th = pack  # degenerate extremely-wide-W case
    else:
        th = max(pack, (block_h // pack) * pack)

    # A full-H block is always layout-legal (block dim == array dim), so
    # clamping never violates the (8,128) rule.
    th = min(th, H)
    grid_h = pl.cdiv(H, th)  # partial last block is clipped by Pallas

    out = pl.pallas_call(
        _repeat_to_3_kernel,
        out_shape=jax.ShapeDtypeStruct((3, H, W), image.dtype),
        grid=(grid_h,),
        in_specs=[pl.BlockSpec((1, th, W), lambda i: (0, i, 0))],
        out_specs=pl.BlockSpec((3, th, W), lambda i: (0, i, 0)),
        compiler_params=pltpu.CompilerParams(
            # On v7x, switching this axis to pltpu.CORE_PARALLEL engages both
            # TensorCores' DMA streams for this pure-bandwidth op.
            dimension_semantics=("parallel",),
        ),
    )(image)
    return out


if __name__ == "__main__":
    key = jax.random.PRNGKey(0)
    k1, k2, k3, k4 = jax.random.split(key, 4)

    # Case 1: grayscale image (1, H, W) -> repeated to (3, H, W), single block.
    x1 = jax.random.normal(k1, (1, 16, 16), dtype=jnp.float32)
    y1 = jax.block_until_ready(resize_channels(x1))
    assert y1.shape == (3, 16, 16), y1.shape
    assert jnp.array_equal(y1, jnp.tile(x1, (3, 1, 1))), "repeat mismatch (case 1)"

    # Case 2: non-128-aligned W and a forced small H-tile -> multi-step grid
    # with a partial (clipped) last block. Exercises the tiled path.
    x2 = jax.random.normal(k2, (1, 20, 50), dtype=jnp.float32)
    y2 = jax.block_until_ready(resize_channels(x2, block_h=8))
    assert y2.shape == (3, 20, 50), y2.shape
    assert jnp.array_equal(y2, jnp.tile(x2, (3, 1, 1))), "repeat mismatch (case 2)"

    # Case 3: bf16 input -> sublane pack of 16, multi-step grid with partial tail.
    x3 = jax.random.normal(k3, (1, 40, 32), dtype=jnp.bfloat16)
    y3 = jax.block_until_ready(resize_channels(x3, block_h=16))
    assert y3.shape == (3, 40, 32), y3.shape
    assert jnp.array_equal(y3, jnp.tile(x3, (3, 1, 1))), "repeat mismatch (case 3)"

    # Case 4: already multi-channel (4, H, W) -> passthrough (no kernel).
    x4 = jax.random.normal(k4, (4, 16, 16), dtype=jnp.float32)
    y4 = jax.block_until_ready(resize_channels(x4))
    assert y4.shape == (4, 16, 16), y4.shape
    assert jnp.array_equal(y4, x4), "identity passthrough mismatch"

    print("KERNEL_OK")
</pallas_src>

<mosaic_0001>
module attributes {stable_mosaic.version = 11 : i64} {
  func.func @_repeat_to_3_kernel(%arg0: i32, %arg1: memref<1x16x16xf32, #tpu.memory_space<vmem>>, %arg2: memref<3x16x16xf32, #tpu.memory_space<vmem>>) attributes {dimension_semantics = [#tpu.dimension_semantics<parallel>], iteration_bounds = array<i64: 1>, scalar_prefetch = 0 : i64, scratch_operands = 0 : i64, tpu.core_type = #tpu.core_type<tc>, window_params = [{transform_indices = @transform_0, window_bounds = array<i64: 1, 16, 16>}, {transform_indices = @transform_1, window_bounds = array<i64: 3, 16, 16>}]} {
    %c0 = arith.constant 0 : index
    %c0_0 = arith.constant 0 : index
    %c0_1 = arith.constant 0 : index
    %0 = vector.load %arg1[%c0, %c0_0, %c0_1] : memref<1x16x16xf32, #tpu.memory_space<vmem>>, vector<1x16x16xf32>
    %1 = vector.shape_cast %0 : vector<1x16x16xf32> to vector<1x16x16xf32>
    %2 = vector.broadcast %1 : vector<1x16x16xf32> to vector<3x16x16xf32>
    %c0_2 = arith.constant 0 : index
    %c0_3 = arith.constant 0 : index
    %c0_4 = arith.constant 0 : index
    %3 = vector.load %arg2[%c0_2, %c0_3, %c0_4] : memref<3x16x16xf32, #tpu.memory_space<vmem>>, vector<3x16x16xf32>
    tpu.vector_store %arg2[%c0_2, %c0_3, %c0_4], %2 {strides = array<i32>} : memref<3x16x16xf32, #tpu.memory_space<vmem>>, vector<3x16x16xf32>,
    return
  }
  func.func @transform_0(%arg0: i32) -> (i32, i32, i32) {
    %c0_i32 = arith.constant 0 : i32
    %c0_i32_0 = arith.constant 0 : i32
    %c0_i32_1 = arith.constant 0 : i32
    return %c0_i32, %arg0, %c0_i32_0 : i32, i32, i32
  }
  func.func @transform_1(%arg0: i32) -> (i32, i32, i32) {
    %c0_i32 = arith.constant 0 : i32
    %c0_i32_0 = arith.constant 0 : i32
    %c0_i32_1 = arith.constant 0 : i32
    return %c0_i32, %arg0, %c0_i32_0 : i32, i32, i32
  }
}

</mosaic_0001>

<bundles_post_ra>
// kernel: tpu_custom_call.1
= control target key start
LH: loop header
LB: loop body
LE: loop exit
PB: predicated region body
PF: predicated region fallthrough
CT: control target
= control target key end

     0   :  { %6 = vsyncpa [#allocation3], 0  ;;  %s129_s0 = inlined_call_operand.hbm [shape: f32[1,16,16], index: 0, kind: input, shape index: {}]   ;;  %s130_s1 = inlined_call_operand.hbm [shape: f32[3,16,16], index: 1, kind: output, shape index: {}]  }
   0x1   :  { %7 = vsyncpa [#allocation4], 0  ;;  %s12_s8 = sshll.u32 %s129_s0, 4  ;;  %s109_s9 = smov [#allocation2]   ;;  %s13_s8 = int_to_ptr.hbm [resolvable:$true] %s12_s8 }
   0x2   :  { %s14_s10 = sshll.u32 %s109_s9, 4  ;;  %s110_s11 = smov 128   ;;  %s15_s10 = int_to_ptr.vmem [resolvable:$true] %s14_s10 }
   0x3   :  { %s111_s12 = smov 8  }
   0x4   :  { %20 = dma.hbm_to_vmem [thread:$0]  %s13_s8, 256, %s15_s10, [#allocation3], %s110_s11, %s110_s11, %s111_s12  }
   0x5   :  { %105 = dma.done.wait [#allocation3], 256  }
   0x6   :  { %106 = vsyncadd [#allocation3], 4294967040  ;;  %vm27_vm0 = vcmask 130048   ;;  %v25_v0 = vld [vmem:[#allocation2] sm:$0xff]  ;;  %v26_v1 = vld [vmem:[#allocation2 + $0x8] sm:$0xff]  ;;  %s112_s13 = smov [#allocation5]  }
   0x7   :  { %28 = vst.msk [vmem:[#allocation5] sm:$0xff] %vm27_vm0, %v25_v0  ;;  %s38_s14 = sshll.u32 %s112_s13, 4  ;;  %s40_s17 = sshll.u32 %s130_s1, 4  ;;  %s39_s14 = int_to_ptr.vmem [resolvable:$true] %s38_s14  ;;  %s41_s17 = int_to_ptr.hbm [resolvable:$true] %s40_s17 }
   0x8   :  { %30 = vst.msk [vmem:[#allocation5 + $0x10] sm:$0xff] %vm27_vm0, %v25_v0 }
   0x9   :  { %32 = vst.msk [vmem:[#allocation5 + $0x20] sm:$0xff] %vm27_vm0, %v25_v0 }
   0xa   :  { %29 = vst.msk [vmem:[#allocation5 + $0x8] sm:$0xff] %vm27_vm0, %v26_v1 }
   0xb   :  { %31 = vst.msk [vmem:[#allocation5 + $0x18] sm:$0xff] %vm27_vm0, %v26_v1 }
   0xc   :  { %33 = vst.msk [vmem:[#allocation5 + $0x28] sm:$0xff] %vm27_vm0, %v26_v1 }
   0xd   :  { %46 = dma.vmem_to_hbm [thread:$0]  %s39_s14, 768, %s41_s17, [#allocation4], %s110_s11, %s110_s11, %s111_s12  }
   0xe   :  { %107 = dma.done.wait [#allocation4], 768  }
   0xf   :  { %108 = vsyncadd [#allocation4], 4294966528 }
  0x10   :  { %51 = vsyncpa [#allocation3], 1 }
  0x11   :  { %52 = vsyncpa [#allocation4], 1 }

</bundles_post_ra>
